<compile_context>
chip_gen: v7x
topology: tpu7x:2x2x1
jax: 0.10.0
libtpu: 0.0.40
codegen_flags: <defaults>
</compile_context>

<pallas_src>
import functools

import jax
import jax.numpy as jnp
from jax.experimental import pallas as pl
from jax.experimental.pallas import tpu as pltpu

_EPS = 1e-5  # matches nn.InstanceNorm2d default


def _fuse_kernel(h_ref, ze_ref, zf_ref,
                 wE_ref, bE_ref, wF_ref, bF_ref,
                 wM_ref, bM_ref, row_ref, col_ref,
                 out_ref, *, H, W):
    """Fused InstanceNorm + FiLM + replication-padded 3x3 mask conv + blend.

    Shapes (batch dim squeezed by the BlockSpec):
      h_ref: (c_h, HW)      ze_ref/zf_ref: (c_ef, HW)
      wE_ref/wF_ref: (2*c_h, c_ef)   bE_ref/bF_ref: (2*c_h, 1)
      wM_ref: (9, c_h)  (row index = 3*dy + dx)   bM_ref: (1, 1) in SMEM
      row_ref/col_ref: (1, HW) int32 pixel row / column indices
      out_ref: (c_h, HW)
    """
    c_h = out_ref.shape[0]
    HW = H * W

    # ---------------- Instance norm (single pass: sum + sum-of-squares) ------
    h = h_ref[...].astype(jnp.float32)                         # (c_h, HW)
    inv_hw = 1.0 / float(HW)
    s1 = jnp.sum(h, axis=1, keepdims=True)                     # (c_h, 1)
    s2 = jnp.sum(h * h, axis=1, keepdims=True)
    mu = s1 * inv_hw
    var = jnp.maximum(s2 * inv_hw - mu * mu, 0.0)              # clamp: no NaN
    hn = (h - mu) * jax.lax.rsqrt(var + _EPS)                  # (c_h, HW)

    # ---------------- Mask: 3x3 conv (c_h -> 1) with replication pad ---------
    # One MXU matmul gives the channel reduction for all 9 taps at once.
    g_all = jnp.dot(wM_ref[...].astype(jnp.float32), hn,
                    preferred_element_type=jnp.float32)        # (9, HW)

    row = row_ref[...]                                         # (1, HW) = p // W
    col = col_ref[...]                                         # (1, HW) = p %  W

    def shift_rows(g, oy):
        # g'(p) = g[clamp(row+oy, 0, H-1), col]  — lane roll + edge-row fixup.
        if oy == 0:
            return g
        shift = (-oy * W) % HW
        rolled = g if shift == 0 else pltpu.roll(g, shift, axis=1)
        edge = (H - 1) if oy > 0 else 0
        return jnp.where(row == edge, g, rolled)

    def shift_cols(g, ox):
        # g'(p) = g[row, clamp(col+ox, 0, W-1)]  — lane roll + edge-col fixup.
        if ox == 0:
            return g
        shift = (-ox) % HW
        rolled = g if shift == 0 else pltpu.roll(g, shift, axis=1)
        edge = (W - 1) if ox > 0 else 0
        return jnp.where(col == edge, g, rolled)

    # out = sum_dx colshift_dx( sum_dy rowshift_dy(g[3*dy+dx]) )
    logit = jnp.zeros((1, HW), jnp.float32)
    for dx in range(3):
        s = jnp.zeros((1, HW), jnp.float32)
        for dy in range(3):
            t = 3 * dy + dx
            s = s + shift_rows(g_all[t:t + 1, :], dy - 1)
        logit = logit + shift_cols(s, dx - 1)
    logit = logit + bM_ref[0, 0].astype(jnp.float32)
    mask = jax.nn.sigmoid(logit)                               # (1, HW)

    # ---------------- FiLM (stacked gamma/beta matmuls) + blend --------------
    ze = ze_ref[...].astype(jnp.float32)                       # (c_ef, HW)
    gb_e = jnp.dot(wE_ref[...].astype(jnp.float32), ze,
                   preferred_element_type=jnp.float32)
    gb_e = gb_e + bE_ref[...].astype(jnp.float32)              # (2*c_h, HW)
    e = gb_e[:c_h, :] * hn + gb_e[c_h:, :]
    acc = mask * e                                             # E consumed here

    zf = zf_ref[...].astype(jnp.float32)
    gb_f = jnp.dot(wF_ref[...].astype(jnp.float32), zf,
                   preferred_element_type=jnp.float32)
    gb_f = gb_f + bF_ref[...].astype(jnp.float32)
    f = gb_f[:c_h, :] * hn + gb_f[c_h:, :]

    out_ref[...] = (acc + (1.0 - mask) * f).astype(out_ref.dtype)


def fuse_layer_pallas(h_in, z_e, z_f, params):
    """FuseLayer.forward(h_in, z_e, z_f) with a single fused Pallas TPU kernel."""
    N, c_h, H, W = h_in.shape
    c_ef = z_e.shape[1]
    HW = H * W
    dt = h_in.dtype
    itemsize = jnp.dtype(dt).itemsize

    # Lane-dense (channels x H*W) layout end-to-end.
    h_flat = h_in.reshape(N, c_h, HW)
    ze_flat = z_e.reshape(N, c_ef, HW)
    zf_flat = z_f.reshape(N, c_ef, HW)

    # Stack gamma/beta weights -> one matmul per z input (rows 0:c_h = gamma).
    wE = jnp.concatenate([params["wE1"], params["wE2"]], axis=0)            # (2c_h, c_ef)
    bE = jnp.concatenate([params["bE1"], params["bE2"]], axis=0).reshape(2 * c_h, 1)
    wF = jnp.concatenate([params["wF1"], params["wF2"]], axis=0)
    bF = jnp.concatenate([params["bF1"], params["bF2"]], axis=0).reshape(2 * c_h, 1)

    # Mask conv taps as a (9, c_h) matrix: row index = 3*dy + dx.
    wM = params["wM"].transpose(1, 2, 0).reshape(9, c_h)
    bM = params["bM"].reshape(1, 1).astype(jnp.float32)

    # Pixel row/col indices for replication-pad edge fixups (tiny constants;
    # precomputed host-side so the kernel needs no integer div/mod).
    pix = jnp.arange(HW, dtype=jnp.int32).reshape(1, HW)
    row_idx = pix // W
    col_idx = pix % W

    per_ch = pl.BlockSpec((None, c_h, HW), lambda n: (n, 0, 0))
    per_cef = pl.BlockSpec((None, c_ef, HW), lambda n: (n, 0, 0))

    def wgt(r, c):
        return pl.BlockSpec((r, c), lambda n: (0, 0))

    # Explicit VMEM budget: double-buffered per-batch I/O blocks + f32
    # temporaries + weights, with headroom; capped below v7x's 64 MiB VMEM.
    io_bytes = 2 * itemsize * HW * (2 * c_h + 2 * c_ef)        # in + out, 2x buffered
    tmp_bytes = 4 * HW * (8 * c_h + 32)                        # hn, gb, e/f, g_all, mask
    wgt_bytes = 4 * (4 * c_h * (c_ef + 1) + 9 * c_h) + 2 * 4 * HW
    vmem_limit = int(min(64 * 2**20,
                         max(4 * (io_bytes + tmp_bytes + wgt_bytes), 16 * 2**20)))

    # NOTE: grid=(N,) marked "parallel" shards batches across the two v7x
    # TensorCores; for N == 1 inference a channel-block axis could be added.
    out_flat = pl.pallas_call(
        functools.partial(_fuse_kernel, H=H, W=W),
        out_shape=jax.ShapeDtypeStruct((N, c_h, HW), dt),
        grid_spec=pltpu.PrefetchScalarGridSpec(
            num_scalar_prefetch=0,
            grid=(N,),
            in_specs=[per_ch, per_cef, per_cef,
                      wgt(2 * c_h, c_ef), wgt(2 * c_h, 1),
                      wgt(2 * c_h, c_ef), wgt(2 * c_h, 1),
                      wgt(9, c_h),
                      pl.BlockSpec(memory_space=pltpu.MemorySpace.SMEM),
                      wgt(1, HW), wgt(1, HW)],
            out_specs=per_ch,
        ),
        compiler_params=pltpu.CompilerParams(
            dimension_semantics=("parallel",),
            vmem_limit_bytes=vmem_limit),
        cost_estimate=pl.CostEstimate(
            flops=N * HW * (8 * c_h * c_ef + 18 * c_h + 20 * c_h + 40),
            transcendentals=N * (HW + c_h),
            bytes_accessed=itemsize * N * HW * (2 * c_h + 2 * c_ef)
            + 4 * (4 * c_h * c_ef + 4 * c_h + 9 * c_h + 1 + 2 * HW)),
    )(h_flat, ze_flat, zf_flat, wE, bE, wF, bF, wM, bM, row_idx, col_idx)

    return out_flat.reshape(N, c_h, H, W)


def init_params(key, c_h, c_ef):
    ks = jax.random.split(key, 10)

    def rnd(k, shape, scale):
        return jax.random.normal(k, shape, jnp.float32) * scale

    return {
        "wE1": rnd(ks[0], (c_h, c_ef), 0.3), "bE1": rnd(ks[1], (c_h,), 0.1),
        "wE2": rnd(ks[2], (c_h, c_ef), 0.3), "bE2": rnd(ks[3], (c_h,), 0.1),
        "wF1": rnd(ks[4], (c_h, c_ef), 0.3), "bF1": rnd(ks[5], (c_h,), 0.1),
        "wF2": rnd(ks[6], (c_h, c_ef), 0.3), "bF2": rnd(ks[7], (c_h,), 0.1),
        "wM": rnd(ks[8], (c_h, 3, 3), 0.3), "bM": rnd(ks[9], (1, 1), 0.1),
    }


def fuse_layer_reference(h_in, z_e, z_f, p):
    """Pure-JAX (XLA) reference implementation of FuseLayer.forward."""
    hi = jax.lax.Precision.HIGHEST
    mu = jnp.mean(h_in, axis=(2, 3), keepdims=True)
    var = jnp.mean(jnp.square(h_in - mu), axis=(2, 3), keepdims=True)
    h = (h_in - mu) / jnp.sqrt(var + _EPS)

    def conv1x1(z, w, b):
        return jnp.einsum("oc,nchw->nohw", w, z,
                          precision=hi) + b[None, :, None, None]

    e = conv1x1(z_e, p["wE1"], p["bE1"]) * h + conv1x1(z_e, p["wE2"], p["bE2"])
    f = conv1x1(z_f, p["wF1"], p["bF1"]) * h + conv1x1(z_f, p["wF2"], p["bF2"])

    h_pad = jnp.pad(h, ((0, 0), (0, 0), (1, 1), (1, 1)), mode="edge")
    logit = jax.lax.conv_general_dilated(
        h_pad, p["wM"][None], window_strides=(1, 1), padding="VALID",
        dimension_numbers=("NCHW", "OIHW", "NCHW"),
        precision=hi) + p["bM"][0, 0]
    mask = jax.nn.sigmoid(logit)
    return mask * e + (1.0 - mask) * f


if __name__ == "__main__":
    key = jax.random.PRNGKey(0)
    N, c_h, c_ef, H, W = 2, 4, 4, 16, 16
    k_h, k_e, k_f, k_p = jax.random.split(key, 4)
    h_in = jax.random.normal(k_h, (N, c_h, H, W), jnp.float32)
    z_e = jax.random.normal(k_e, (N, c_ef, H, W), jnp.float32)
    z_f = jax.random.normal(k_f, (N, c_ef, H, W), jnp.float32)
    params = init_params(k_p, c_h, c_ef)

    fuse_fn = jax.jit(fuse_layer_pallas)
    out = fuse_fn(h_in, z_e, z_f, params)
    jax.block_until_ready(out)

    ref = fuse_layer_reference(h_in, z_e, z_f, params)
    assert out.shape == ref.shape and out.dtype == ref.dtype
    max_err = float(jnp.max(jnp.abs(out - ref)))
    assert jnp.allclose(out, ref, atol=3e-3, rtol=3e-3), f"max abs err={max_err}"
    print("KERNEL_OK")
</pallas_src>

<mosaic_0001>
module attributes {stable_mosaic.version = 11 : i64} {
  func.func @_fuse_kernel(%arg0: i32, %arg1: memref<1x4x256xf32, #tpu.memory_space<vmem>>, %arg2: memref<1x4x256xf32, #tpu.memory_space<vmem>>, %arg3: memref<1x4x256xf32, #tpu.memory_space<vmem>>, %arg4: memref<8x4xf32, #tpu.memory_space<vmem>>, %arg5: memref<8x1xf32, #tpu.memory_space<vmem>>, %arg6: memref<8x4xf32, #tpu.memory_space<vmem>>, %arg7: memref<8x1xf32, #tpu.memory_space<vmem>>, %arg8: memref<9x4xf32, #tpu.memory_space<vmem>>, %arg9: memref<1x1xf32, #tpu.memory_space<smem>>, %arg10: memref<1x256xi32, #tpu.memory_space<vmem>>, %arg11: memref<1x256xi32, #tpu.memory_space<vmem>>, %arg12: memref<1x4x256xf32, #tpu.memory_space<vmem>>) attributes {dimension_semantics = [#tpu.dimension_semantics<parallel>], iteration_bounds = array<i64: 2>, scalar_prefetch = 0 : i64, scratch_operands = 0 : i64, tpu.core_type = #tpu.core_type<tc>, window_params = [{transform_indices = @transform_0, window_bounds = array<i64: 1, 4, 256>}, {transform_indices = @transform_1, window_bounds = array<i64: 1, 4, 256>}, {transform_indices = @transform_2, window_bounds = array<i64: 1, 4, 256>}, {pipeline_mode = #tpu.pipeline_mode<synchronous>, transform_indices = @transform_3, window_bounds = array<i64: 8, 4>}, {pipeline_mode = #tpu.pipeline_mode<synchronous>, transform_indices = @transform_4, window_bounds = array<i64: 8, 1>}, {pipeline_mode = #tpu.pipeline_mode<synchronous>, transform_indices = @transform_5, window_bounds = array<i64: 8, 4>}, {pipeline_mode = #tpu.pipeline_mode<synchronous>, transform_indices = @transform_6, window_bounds = array<i64: 8, 1>}, {pipeline_mode = #tpu.pipeline_mode<synchronous>, transform_indices = @transform_7, window_bounds = array<i64: 9, 4>}, {transform_indices = @transform_8, window_bounds = array<i64: 1, 1>}, {pipeline_mode = #tpu.pipeline_mode<synchronous>, transform_indices = @transform_9, window_bounds = array<i64: 1, 256>}, {pipeline_mode = #tpu.pipeline_mode<synchronous>, transform_indices = @transform_10, window_bounds = array<i64: 1, 256>}, {transform_indices = @transform_11, window_bounds = array<i64: 1, 4, 256>}]} {
    %c0 = arith.constant 0 : index
    %c0_0 = arith.constant 0 : index
    %c0_1 = arith.constant 0 : index
    %0 = vector.load %arg1[%c0, %c0_0, %c0_1] : memref<1x4x256xf32, #tpu.memory_space<vmem>>, vector<1x4x256xf32>
    %1 = vector.shape_cast %0 : vector<1x4x256xf32> to vector<4x256xf32>
    %cst = arith.constant dense<0.000000e+00> : vector<4xf32>
    %2 = vector.multi_reduction <add>, %1, %cst [1] : vector<4x256xf32> to vector<4xf32>
    %3 = vector.shape_cast %2 : vector<4xf32> to vector<4x1xf32>
    %4 = arith.mulf %1, %1 : vector<4x256xf32>
    %cst_2 = arith.constant dense<0.000000e+00> : vector<4xf32>
    %5 = vector.multi_reduction <add>, %4, %cst_2 [1] : vector<4x256xf32> to vector<4xf32>
    %6 = vector.shape_cast %5 : vector<4xf32> to vector<4x1xf32>
    %cst_3 = arith.constant 3.906250e-03 : f32
    %7 = vector.broadcast %cst_3 : f32 to vector<4x1xf32>
    %8 = arith.mulf %3, %7 : vector<4x1xf32>
    %cst_4 = arith.constant 3.906250e-03 : f32
    %9 = vector.broadcast %cst_4 : f32 to vector<4x1xf32>
    %10 = arith.mulf %6, %9 : vector<4x1xf32>
    %11 = arith.mulf %8, %8 : vector<4x1xf32>
    %12 = arith.subf %10, %11 : vector<4x1xf32>
    %cst_5 = arith.constant 0.000000e+00 : f32
    %13 = vector.broadcast %cst_5 : f32 to vector<4x1xf32>
    %14 = arith.maximumf %12, %13 : vector<4x1xf32>
    %15 = vector.broadcast %8 : vector<4x1xf32> to vector<4x256xf32>
    %16 = arith.subf %1, %15 : vector<4x256xf32>
    %cst_6 = arith.constant 9.99999974E-6 : f32
    %17 = vector.broadcast %cst_6 : f32 to vector<4x1xf32>
    %18 = arith.addf %14, %17 : vector<4x1xf32>
    %19 = math.rsqrt %18 : vector<4x1xf32>
    %20 = vector.broadcast %19 : vector<4x1xf32> to vector<4x256xf32>
    %21 = arith.mulf %16, %20 : vector<4x256xf32>
    %c0_7 = arith.constant 0 : index
    %c0_8 = arith.constant 0 : index
    %22 = vector.load %arg8[%c0_7, %c0_8] : memref<9x4xf32, #tpu.memory_space<vmem>>, vector<9x4xf32>
    %cst_9 = arith.constant dense<0.000000e+00> : vector<9x256xf32>
    %23 = tpu.matmul %22, %21, %cst_9 {dimension_numbers = #tpu.dot_dimension_numbers<[1], [0], [0], [1], [0, 0, 1, 1], [], []>} : vector<9x4xf32>, vector<4x256xf32>, vector<9x256xf32> -> vector<9x256xf32>
    %c0_10 = arith.constant 0 : index
    %c0_11 = arith.constant 0 : index
    %24 = vector.load %arg10[%c0_10, %c0_11] : memref<1x256xi32, #tpu.memory_space<vmem>>, vector<1x256xi32>
    %c0_12 = arith.constant 0 : index
    %c0_13 = arith.constant 0 : index
    %25 = vector.load %arg11[%c0_12, %c0_13] : memref<1x256xi32, #tpu.memory_space<vmem>>, vector<1x256xi32>
    %cst_14 = arith.constant 0.000000e+00 : f32
    %26 = vector.broadcast %cst_14 : f32 to vector<1x256xf32>
    %cst_15 = arith.constant 0.000000e+00 : f32
    %27 = vector.broadcast %cst_15 : f32 to vector<1x256xf32>
    %28 = vector.extract_strided_slice %23 {offsets = [0, 0], sizes = [1, 256], strides = [1, 1]} : vector<9x256xf32> to vector<1x256xf32>
    %c16_i32 = arith.constant 16 : i32
    %29 = tpu.dynamic_rotate %28 by %c16_i32 dim 1 : vector<1x256xf32>, i32 -> vector<1x256xf32>
    %c0_i32 = arith.constant 0 : i32
    %30 = vector.broadcast %c0_i32 : i32 to vector<1x256xi32>
    %31 = arith.cmpi eq, %24, %30 : vector<1x256xi32>
    %32 = arith.select %31, %28, %29 : vector<1x256xi1>, vector<1x256xf32>
    %33 = arith.addf %27, %32 : vector<1x256xf32>
    %34 = vector.extract_strided_slice %23 {offsets = [3, 0], sizes = [1, 256], strides = [1, 1]} : vector<9x256xf32> to vector<1x256xf32>
    %35 = arith.addf %33, %34 : vector<1x256xf32>
    %36 = vector.extract_strided_slice %23 {offsets = [6, 0], sizes = [1, 256], strides = [1, 1]} : vector<9x256xf32> to vector<1x256xf32>
    %c240_i32 = arith.constant 240 : i32
    %37 = tpu.dynamic_rotate %36 by %c240_i32 dim 1 : vector<1x256xf32>, i32 -> vector<1x256xf32>
    %c15_i32 = arith.constant 15 : i32
    %38 = vector.broadcast %c15_i32 : i32 to vector<1x256xi32>
    %39 = arith.cmpi eq, %24, %38 : vector<1x256xi32>
    %40 = arith.select %39, %36, %37 : vector<1x256xi1>, vector<1x256xf32>
    %41 = arith.addf %35, %40 : vector<1x256xf32>
    %c1_i32 = arith.constant 1 : i32
    %42 = tpu.dynamic_rotate %41 by %c1_i32 dim 1 : vector<1x256xf32>, i32 -> vector<1x256xf32>
    %c0_i32_16 = arith.constant 0 : i32
    %43 = vector.broadcast %c0_i32_16 : i32 to vector<1x256xi32>
    %44 = arith.cmpi eq, %25, %43 : vector<1x256xi32>
    %45 = arith.select %44, %41, %42 : vector<1x256xi1>, vector<1x256xf32>
    %46 = arith.addf %26, %45 : vector<1x256xf32>
    %cst_17 = arith.constant 0.000000e+00 : f32
    %47 = vector.broadcast %cst_17 : f32 to vector<1x256xf32>
    %48 = vector.extract_strided_slice %23 {offsets = [1, 0], sizes = [1, 256], strides = [1, 1]} : vector<9x256xf32> to vector<1x256xf32>
    %c16_i32_18 = arith.constant 16 : i32
    %49 = tpu.dynamic_rotate %48 by %c16_i32_18 dim 1 : vector<1x256xf32>, i32 -> vector<1x256xf32>
    %c0_i32_19 = arith.constant 0 : i32
    %50 = vector.broadcast %c0_i32_19 : i32 to vector<1x256xi32>
    %51 = arith.cmpi eq, %24, %50 : vector<1x256xi32>
    %52 = arith.select %51, %48, %49 : vector<1x256xi1>, vector<1x256xf32>
    %53 = arith.addf %47, %52 : vector<1x256xf32>
    %54 = vector.extract_strided_slice %23 {offsets = [4, 0], sizes = [1, 256], strides = [1, 1]} : vector<9x256xf32> to vector<1x256xf32>
    %55 = arith.addf %53, %54 : vector<1x256xf32>
    %56 = vector.extract_strided_slice %23 {offsets = [7, 0], sizes = [1, 256], strides = [1, 1]} : vector<9x256xf32> to vector<1x256xf32>
    %c240_i32_20 = arith.constant 240 : i32
    %57 = tpu.dynamic_rotate %56 by %c240_i32_20 dim 1 : vector<1x256xf32>, i32 -> vector<1x256xf32>
    %c15_i32_21 = arith.constant 15 : i32
    %58 = vector.broadcast %c15_i32_21 : i32 to vector<1x256xi32>
    %59 = arith.cmpi eq, %24, %58 : vector<1x256xi32>
    %60 = arith.select %59, %56, %57 : vector<1x256xi1>, vector<1x256xf32>
    %61 = arith.addf %55, %60 : vector<1x256xf32>
    %62 = arith.addf %46, %61 : vector<1x256xf32>
    %cst_22 = arith.constant 0.000000e+00 : f32
    %63 = vector.broadcast %cst_22 : f32 to vector<1x256xf32>
    %64 = vector.extract_strided_slice %23 {offsets = [2, 0], sizes = [1, 256], strides = [1, 1]} : vector<9x256xf32> to vector<1x256xf32>
    %c16_i32_23 = arith.constant 16 : i32
    %65 = tpu.dynamic_rotate %64 by %c16_i32_23 dim 1 : vector<1x256xf32>, i32 -> vector<1x256xf32>
    %c0_i32_24 = arith.constant 0 : i32
    %66 = vector.broadcast %c0_i32_24 : i32 to vector<1x256xi32>
    %67 = arith.cmpi eq, %24, %66 : vector<1x256xi32>
    %68 = arith.select %67, %64, %65 : vector<1x256xi1>, vector<1x256xf32>
    %69 = arith.addf %63, %68 : vector<1x256xf32>
    %70 = vector.extract_strided_slice %23 {offsets = [5, 0], sizes = [1, 256], strides = [1, 1]} : vector<9x256xf32> to vector<1x256xf32>
    %71 = arith.addf %69, %70 : vector<1x256xf32>
    %72 = vector.extract_strided_slice %23 {offsets = [8, 0], sizes = [1, 256], strides = [1, 1]} : vector<9x256xf32> to vector<1x256xf32>
    %c240_i32_25 = arith.constant 240 : i32
    %73 = tpu.dynamic_rotate %72 by %c240_i32_25 dim 1 : vector<1x256xf32>, i32 -> vector<1x256xf32>
    %c15_i32_26 = arith.constant 15 : i32
    %74 = vector.broadcast %c15_i32_26 : i32 to vector<1x256xi32>
    %75 = arith.cmpi eq, %24, %74 : vector<1x256xi32>
    %76 = arith.select %75, %72, %73 : vector<1x256xi1>, vector<1x256xf32>
    %77 = arith.addf %71, %76 : vector<1x256xf32>
    %c255_i32 = arith.constant 255 : i32
    %78 = tpu.dynamic_rotate %77 by %c255_i32 dim 1 : vector<1x256xf32>, i32 -> vector<1x256xf32>
    %c15_i32_27 = arith.constant 15 : i32
    %79 = vector.broadcast %c15_i32_27 : i32 to vector<1x256xi32>
    %80 = arith.cmpi eq, %25, %79 : vector<1x256xi32>
    %81 = arith.select %80, %77, %78 : vector<1x256xi1>, vector<1x256xf32>
    %82 = arith.addf %62, %81 : vector<1x256xf32>
    %c0_28 = arith.constant 0 : index
    %c0_29 = arith.constant 0 : index
    %83 = memref.load %arg9[%c0_28, %c0_29] : memref<1x1xf32, #tpu.memory_space<smem>>
    %84 = vector.broadcast %83 : f32 to vector<1x256xf32>
    %85 = arith.addf %82, %84 : vector<1x256xf32>
    %86 = arith.negf %85 : vector<1x256xf32>
    %87 = math.exp %86 : vector<1x256xf32>
    %cst_30 = arith.constant 1.000000e+00 : f32
    %88 = vector.broadcast %cst_30 : f32 to vector<1x256xf32>
    %89 = arith.addf %88, %87 : vector<1x256xf32>
    %90 = arith.divf %88, %89 : vector<1x256xf32>
    %c0_31 = arith.constant 0 : index
    %c0_32 = arith.constant 0 : index
    %c0_33 = arith.constant 0 : index
    %91 = vector.load %arg2[%c0_31, %c0_32, %c0_33] : memref<1x4x256xf32, #tpu.memory_space<vmem>>, vector<1x4x256xf32>
    %92 = vector.shape_cast %91 : vector<1x4x256xf32> to vector<4x256xf32>
    %c0_34 = arith.constant 0 : index
    %c0_35 = arith.constant 0 : index
    %93 = vector.load %arg4[%c0_34, %c0_35] : memref<8x4xf32, #tpu.memory_space<vmem>>, vector<8x4xf32>
    %cst_36 = arith.constant dense<0.000000e+00> : vector<8x256xf32>
    %94 = tpu.matmul %93, %92, %cst_36 {dimension_numbers = #tpu.dot_dimension_numbers<[1], [0], [0], [1], [0, 0, 1, 1], [], []>} : vector<8x4xf32>, vector<4x256xf32>, vector<8x256xf32> -> vector<8x256xf32>
    %c0_37 = arith.constant 0 : index
    %c0_38 = arith.constant 0 : index
    %95 = vector.load %arg5[%c0_37, %c0_38] : memref<8x1xf32, #tpu.memory_space<vmem>>, vector<8x1xf32>
    %96 = vector.broadcast %95 : vector<8x1xf32> to vector<8x256xf32>
    %97 = arith.addf %94, %96 : vector<8x256xf32>
    %98 = vector.extract_strided_slice %97 {offsets = [0, 0], sizes = [4, 256], strides = [1, 1]} : vector<8x256xf32> to vector<4x256xf32>
    %99 = arith.mulf %98, %21 : vector<4x256xf32>
    %100 = vector.extract_strided_slice %97 {offsets = [4, 0], sizes = [4, 256], strides = [1, 1]} : vector<8x256xf32> to vector<4x256xf32>
    %101 = arith.addf %99, %100 : vector<4x256xf32>
    %102 = vector.broadcast %90 : vector<1x256xf32> to vector<4x256xf32>
    %103 = arith.mulf %102, %101 : vector<4x256xf32>
    %c0_39 = arith.constant 0 : index
    %c0_40 = arith.constant 0 : index
    %c0_41 = arith.constant 0 : index
    %104 = vector.load %arg3[%c0_39, %c0_40, %c0_41] : memref<1x4x256xf32, #tpu.memory_space<vmem>>, vector<1x4x256xf32>
    %105 = vector.shape_cast %104 : vector<1x4x256xf32> to vector<4x256xf32>
    %c0_42 = arith.constant 0 : index
    %c0_43 = arith.constant 0 : index
    %106 = vector.load %arg6[%c0_42, %c0_43] : memref<8x4xf32, #tpu.memory_space<vmem>>, vector<8x4xf32>
    %cst_44 = arith.constant dense<0.000000e+00> : vector<8x256xf32>
    %107 = tpu.matmul %106, %105, %cst_44 {dimension_numbers = #tpu.dot_dimension_numbers<[1], [0], [0], [1], [0, 0, 1, 1], [], []>} : vector<8x4xf32>, vector<4x256xf32>, vector<8x256xf32> -> vector<8x256xf32>
    %c0_45 = arith.constant 0 : index
    %c0_46 = arith.constant 0 : index
    %108 = vector.load %arg7[%c0_45, %c0_46] : memref<8x1xf32, #tpu.memory_space<vmem>>, vector<8x1xf32>
    %109 = vector.broadcast %108 : vector<8x1xf32> to vector<8x256xf32>
    %110 = arith.addf %107, %109 : vector<8x256xf32>
    %111 = vector.extract_strided_slice %110 {offsets = [0, 0], sizes = [4, 256], strides = [1, 1]} : vector<8x256xf32> to vector<4x256xf32>
    %112 = arith.mulf %111, %21 : vector<4x256xf32>
    %113 = vector.extract_strided_slice %110 {offsets = [4, 0], sizes = [4, 256], strides = [1, 1]} : vector<8x256xf32> to vector<4x256xf32>
    %114 = arith.addf %112, %113 : vector<4x256xf32>
    %cst_47 = arith.constant 1.000000e+00 : f32
    %115 = vector.broadcast %cst_47 : f32 to vector<1x256xf32>
    %116 = arith.subf %115, %90 : vector<1x256xf32>
    %117 = vector.broadcast %116 : vector<1x256xf32> to vector<4x256xf32>
    %118 = arith.mulf %117, %114 : vector<4x256xf32>
    %119 = arith.addf %103, %118 : vector<4x256xf32>
    %c0_48 = arith.constant 0 : index
    %c0_49 = arith.constant 0 : index
    %c0_50 = arith.constant 0 : index
    %120 = vector.load %arg12[%c0_48, %c0_49, %c0_50] : memref<1x4x256xf32, #tpu.memory_space<vmem>>, vector<1x4x256xf32>
    %121 = vector.shape_cast %120 : vector<1x4x256xf32> to vector<4x256xf32>
    %122 = vector.shape_cast %119 : vector<4x256xf32> to vector<1x4x256xf32>
    tpu.vector_store %arg12[%c0_48, %c0_49, %c0_50], %122 {strides = array<i32>} : memref<1x4x256xf32, #tpu.memory_space<vmem>>, vector<1x4x256xf32>,
    return
  }
  func.func @transform_0(%arg0: i32) -> (i32, i32, i32) {
    %c0_i32 = arith.constant 0 : i32
    %c0_i32_0 = arith.constant 0 : i32
    %c0_i32_1 = arith.constant 0 : i32
    return %arg0, %c0_i32, %c0_i32_0 : i32, i32, i32
  }
  func.func @transform_1(%arg0: i32) -> (i32, i32, i32) {
    %c0_i32 = arith.constant 0 : i32
    %c0_i32_0 = arith.constant 0 : i32
    %c0_i32_1 = arith.constant 0 : i32
    return %arg0, %c0_i32, %c0_i32_0 : i32, i32, i32
  }
  func.func @transform_2(%arg0: i32) -> (i32, i32, i32) {
    %c0_i32 = arith.constant 0 : i32
    %c0_i32_0 = arith.constant 0 : i32
    %c0_i32_1 = arith.constant 0 : i32
    return %arg0, %c0_i32, %c0_i32_0 : i32, i32, i32
  }
  func.func @transform_3(%arg0: i32) -> (i32, i32) {
    %c0_i32 = arith.constant 0 : i32
    %c0_i32_0 = arith.constant 0 : i32
    %c0_i32_1 = arith.constant 0 : i32
    return %c0_i32, %c0_i32_0 : i32, i32
  }
  func.func @transform_4(%arg0: i32) -> (i32, i32) {
    %c0_i32 = arith.constant 0 : i32
    %c0_i32_0 = arith.constant 0 : i32
    %c0_i32_1 = arith.constant 0 : i32
    return %c0_i32, %c0_i32_0 : i32, i32
  }
  func.func @transform_5(%arg0: i32) -> (i32, i32) {
    %c0_i32 = arith.constant 0 : i32
    %c0_i32_0 = arith.constant 0 : i32
    %c0_i32_1 = arith.constant 0 : i32
    return %c0_i32, %c0_i32_0 : i32, i32
  }
  func.func @transform_6(%arg0: i32) -> (i32, i32) {
    %c0_i32 = arith.constant 0 : i32
    %c0_i32_0 = arith.constant 0 : i32
    %c0_i32_1 = arith.constant 0 : i32
    return %c0_i32, %c0_i32_0 : i32, i32
  }
  func.func @transform_7(%arg0: i32) -> (i32, i32) {
    %c0_i32 = arith.constant 0 : i32
    %c0_i32_0 = arith.constant 0 : i32
    %c0_i32_1 = arith.constant 0 : i32
    return %c0_i32, %c0_i32_0 : i32, i32
  }
  func.func @transform_8(%arg0: i32) -> (i32, i32) {
    %c0_i32 = arith.constant 0 : i32
    %c0_i32_0 = arith.constant 0 : i32
    %c0_i32_1 = arith.constant 0 : i32
    return %c0_i32, %c0_i32_0 : i32, i32
  }
  func.func @transform_9(%arg0: i32) -> (i32, i32) {
    %c0_i32 = arith.constant 0 : i32
    %c0_i32_0 = arith.constant 0 : i32
    %c0_i32_1 = arith.constant 0 : i32
    return %c0_i32, %c0_i32_0 : i32, i32
  }
  func.func @transform_10(%arg0: i32) -> (i32, i32) {
    %c0_i32 = arith.constant 0 : i32
    %c0_i32_0 = arith.constant 0 : i32
    %c0_i32_1 = arith.constant 0 : i32
    return %c0_i32, %c0_i32_0 : i32, i32
  }
  func.func @transform_11(%arg0: i32) -> (i32, i32, i32) {
    %c0_i32 = arith.constant 0 : i32
    %c0_i32_0 = arith.constant 0 : i32
    %c0_i32_1 = arith.constant 0 : i32
    return %arg0, %c0_i32, %c0_i32_0 : i32, i32, i32
  }
}

</mosaic_0001>

<bundles_post_ra>
// kernel: fuse_layer_pallas.1
= control target key start
LH: loop header
LB: loop body
LE: loop exit
PB: predicated region body
PF: predicated region fallthrough
CT: control target
= control target key end

     0   :  { %s1361_s19 = smov 0   ;;  %s1553_s0 = inlined_call_operand.vmem [shape: f32[2,4,256], index: 0, kind: input, shape index: {}]   ;;  %s1554_s1 = inlined_call_operand.vmem [shape: f32[2,4,256], index: 1, kind: input, shape index: {}]   ;;  %s1555_s2 = inlined_call_operand.vmem [shape: f32[2,4,256], index: 2, kind: input, shape index: {}]   ;;  %s1556_s3 = inlined_call_operand.vmem [shape: f32[8,4], index: 3, kind: input, shape index: {}]   ;;  %s1557_s4 = inlined_call_operand.vmem [shape: f32[8,1], index: 4, kind: input, shape index: {}]   ;;  %s1558_s5 = inlined_call_operand.vmem [shape: f32[8,4], index: 5, kind: input, shape index: {}]   ;;  %s1559_s6 = inlined_call_operand.vmem [shape: f32[8,1], index: 6, kind: input, shape index: {}]   ;;  %s1560_s7 = inlined_call_operand.vmem [shape: f32[9,4], index: 7, kind: input, shape index: {}]   ;;  %s1561_s8 = inlined_call_operand.<no memory space> [shape: f32[1,1], index: 8, kind: input, shape index: {}]   ;;  %s1562_s9 = inlined_call_operand.vmem [shape: s32[1,256], index: 9, kind: input, shape index: {}]   ;;  %s1563_s10 = inlined_call_operand.vmem [shape: s32[1,256], index: 10, kind: input, shape index: {}]   ;;  %s1564_s11 = inlined_call_operand.vmem [shape: f32[2,4,256], index: 11, kind: output, shape index: {}]  }
   0x1   :  { %16 = sst [smem:[#allocation2]] %s1561_s8 }
   0x2 LB: > { %s1225_s20 = sadd.s32 4294967295, %s1288_s19   ;;  %p1229_p0 = scmp.ge.s32.totalorder %s1288_s19, 1  ;;  %s1288_s19 = sphi %s1361_s19, %s22_s19  }
   0x3   : > { %p358_p1 = scmp.lt.s32.totalorder %s1288_s19, 3 }
   0x5   : > { %p359_p2 = pnand %p1229_p0, %p358_p1 }
   0x6   : > { %p408_p3 = scmp.lt.s32.totalorder (!%p359_p2), %s1225_s20, 1  ;;  %vm432_vm0 = vcmask (!%p359_p2), 1043456   ;;  %v1290_v10 = vmov (!%p359_p2), 0.0   ;;  %v1291_v17 = vmov (!%p359_p2), 839922192   ;;  %v456_v19 = vlaneseq (!%p359_p2)  ;;  %v474_v31 = vld [vmem:[%s1560_s7] sm:$0xff] (!%p359_p2) }
   0x7   : > { %362 = sbr.rel (%p359_p2) target bundleno = 723 (0x2d3), region = 64  ;;  %553 = vmatprep.mubr.f32.mxu0 (!%p359_p2), %v1290_v10  ;;  %996 = vmatprep.mubr.f32.mxu1 (!%p359_p2), %v1290_v10  ;;  %v454_v18 = vunpack.c.l.s4 (!%p359_p2), %v1291_v17  ;;  %vm478_vm1 = vcmask (!%p359_p2), 31744   ;;  %v475_v32 = vld [vmem:[%s1560_s7 + $0x8] sm:$0x1] (!%p359_p2)  ;;  %v916_v37 = vld [vmem:[%s1556_s3] sm:$0xff] (!%p359_p2)  ;;  %s1293_s8 = smov (!%p359_p2), 112  }
   0x8   : > { %v1380_v23 = vshrl.u32 (!%p359_p2), %v456_v19, 7  ;;  %v1028_v38 = vld [vmem:[%s1558_s5] sm:$0xff] (!%p359_p2)  ;;  %v1294_v53 = vmov (!%p359_p2), 0   ;;  %v1295_v55 = vmov (!%p359_p2), 1966171168   ;;  %v1430_v58 = vand.u32 (!%p359_p2), 127, %v456_v19 }
   0x9   : > { %v455_v22 = vunpack.c.0.s8 (!%p359_p2), %v454_v18  ;;  %1272 = vset.pattern.permute.xlu0 (!%p359_p2), %v1294_v53  ;;  %1271 = vset.pattern.permute.xlu1 (!%p359_p2), %v1294_v53  ;;  %v582_v56 = vunpack.c.l.s4 (!%p359_p2), %v1295_v55  ;;  %s1296_s24 = smov (!%p359_p2), 1   ;;  %s1297_s25 = smov (!%p359_p2), 127  }
   0xa   : > { %vm574_vm2 = vcmp.lt.s32.totalorder (!%p359_p2), %v1430_v58, 16  ;;  %vm635_vm3 = vcmp.lt.s32.totalorder (!%p359_p2), %v1430_v58, 112  ;;  %vm691_vm6 = vcmp.lt.s32.totalorder (!%p359_p2), %v1430_v58, 1  ;;  %vm882_vm7 = vcmp.lt.s32.totalorder (!%p359_p2), %v1430_v58, 127  ;;  %s906_s13 = sld [smem:[#allocation2]] (!%p359_p2) }
   0xb   : > { %v458_v24 = vsub.s32 (!%p359_p2), %v455_v22, %v1380_v23  ;;  %v583_v57 = vunpack.c.0.s8 (!%p359_p2), %v582_v56 }
   0xd   : > { %v1433_v60 = vsub.s32 (!%p359_p2), %v583_v57, %v1380_v23 }
   0xe   : > { %s1566_s20 = smov (!%p408_p3, %s1225_s20), 1 }
   0xf   : > { %s1369_s21 = sshll.u32 %s1566_s20, 3  ;;  %s1292_s20 = smov 16  }
  0x10   : > { %s412_s23 = scalar_lea.vmem %s1553_s0, %s1369_s21  ;;  %s417_s30 = scalar_lea.vmem %s1554_s1, %s1369_s21 }
  0x11   : > { %v428_v0 = vld [vmem:[%s412_s23] sm:$0xff]  ;;  %s422_s14 = scalar_lea.vmem %s1555_s2, %s1369_s21  ;;  %s427_s16 = scalar_lea.vmem %s1564_s11, %s1369_s21 }
  0x12   : > { %v430_v1 = vcombine.high %v428_v0, %v428_v0  ;;  %v433_v2 = vsel %vm432_vm0, %v428_v0, 0.0  ;;  %v438_v3 = vmul.f32 %v428_v0, %v428_v0  ;;  %v915_v33 = vld [vmem:[%s417_s30] sm:$0xff] }
  0x13   : > { %v1027_v34 = vld [vmem:[%s422_s14] sm:$0xff]  ;;  %v924_v35 = vcombine.high %v915_v33, %v915_v33 }
  0x14   : > { %v434_v4 = vsel %vm432_vm0, %v430_v1, 0.0  ;;  %v440_v5 = vcombine.high %v438_v3, %v438_v3  ;;  %v442_v6 = vsel %vm432_vm0, %v438_v3, 0.0  ;;  %v1036_v36 = vcombine.high %v1027_v34, %v1027_v34 }
  0x15   : > { %v435_v7 = vadd.f32 %v434_v4, %v433_v2  ;;  %1243 = vmatprep.subr.msk.mxu1 %vm432_vm0, %v924_v35 }
  0x16   : > { %v443_v8 = vsel %vm432_vm0, %v440_v5, 0.0  ;;  %1244 = vmatpush1.msk.msra.mxu1 %vm432_vm0, %v915_v33 }
  0x17   : > { %436 = vadd.xlane.f32.xlu0 %v435_v7  ;;  %v444_v9 = vadd.f32 %v443_v8, %v442_v6  ;;  %1245 = vmatmul.mubr.msk.f32.vlgmr.msra.gmra.mrb[0].mxu1 %vm478_vm1, %v916_v37  ;;  %v1446_v6 = vld [vmem:[%s1562_s9] sm:$0x3] }
  0x18   : > { %1246 = vmatprep.subr.msk.mxu1 %vm432_vm0, %v1036_v36  ;;  %1108 = vmatprep.mubr.f32.mxu1 %v1290_v10  ;;  %vm577_vm4 = vcmp.eq.s32.totalorder %v1446_v6, 0  ;;  %vm638_vm5 = vcmp.eq.s32.totalorder %v1446_v6, 15 }
  0x19   : > { %1247 = vmatpush1.msk.msra.mxu1 %vm432_vm0, %v1027_v34 }
  0x1b   : > { %445 = vadd.xlane.f32.xlu0 %v444_v9  ;;  %1248 = vmatmul.mubr.msk.f32.vlgmr.msra.gmra.mrb[2].mxu1 %vm478_vm1, %v1028_v38 }
  0xa4   : > { %v437_v11 = vpop.xlane.xlu0 %436 }
  0xa5   : > { %v447_v12 = vmul.f32 0.00390625, %v437_v11 }
  0xa7   : > { %v449_v14 = vmul.f32 %v447_v12, %v447_v12  ;;  %v459_v25 = vrot.slane %v447_v12, %v458_v24 }
  0xa8   : > { %v446_v13 = vpop.xlane.xlu0 %445 }
  0xa9   : > { %v448_v15 = vmul.f32 0.00390625, %v446_v13  ;;  %v461_v27 = vsub.f32 %v428_v0, %v459_v25 }
  0xab   : > { %v450_v16 = vsub.f32 %v448_v15, %v449_v14 }
  0xad   : > { %v451_v20 = vmax.f32 %v450_v16, 0.0 }
  0xaf   : > { %v462_v21 = vadd.f32 1e-05, %v451_v20 }
  0xb1   : > { %1276 = vrsqrt.f32 %v462_v21 }
  0xbb   : > { %v1277_v26 = vpop.eup %1276 }
  0xbc   : > { %v471_v28 = vrot.slane %v1277_v26, %v458_v24 }
  0xbe   : > { %v1383_v29 = vmul.f32 %v471_v28, %v461_v27  ;;  %v1472_v27 = vsub.s32 1, %v1380_v23  ;;  %v1475_v28 = vsub.s32 0, %v1380_v23 }
  0xc0   : > { %v1387_v30 = vcombine.high %v1383_v29, %v1383_v29 }
  0xc2   : > { %1238 = vmatprep.subr.msk.mxu0 %vm432_vm0, %v1387_v30 }
  0xc3   : > { %1239 = vmatpush1.msk.msra.mxu0 %vm432_vm0, %v1383_v29 }
  0xc4   : > { %1240 = vmatmul.mubr.msk.f32.vlgmr.msra.gmra.mrb[0].mxu0 %vm478_vm1, %v474_v31 }
  0xc5   : > { %559 = vmatprep.mubr.f32.mxu0 %v1290_v10 }
  0xc8   : > { %1241 = vmatmul.mubr.msk.f32.gmra.mrb[2].mxu0 %vm478_vm1, %v475_v32 }
 0x197   : > { %v555_v39 = vpop.f32.mrb[0].mxu0 }
 0x198   : > { %568 = vrot.lane.b32.xlu1 %v555_v39, %s1292_s20  ;;  %v557_v40 = vpop.f32.mrb[1].mxu0  ;;  %v627_v41 = vrot.slane %v555_v39, 6  ;;  %v789_v48 = vrot.slane %v555_v39, 2  ;;  %v715_v52 = vrot.slane %v555_v39, 1  ;;  %v748_v54 = vrot.slane %v555_v39, 7 }
 0x199   : > { %v580_v42 = vcombine.low %v555_v39, %v557_v40  ;;  %v639_v43 = vcombine.high %v555_v39, %v557_v40  ;;  %v716_v45 = vrot.slane %v557_v40, 1  ;;  %v749_v49 = vrot.slane %v557_v40, 7 }
 0x19a   : > { %631 = vrot.lane.b32.xlu0 %v627_v41, %s1293_s8  ;;  %v628_v50 = vrot.slane %v557_v40, 6  ;;  %v790_v51 = vrot.slane %v557_v40, 2 }
 0x19b   : > { %v1421_v44 = vpop.f32.mrb[2].mxu0  ;;  %v587_v62 = vrot.slane %v580_v42, %v1433_v60  ;;  %v646_v5 = vrot.slane %v639_v43, %v1433_v60 }
 0x19c   : > { %570 = vrot.lane.b32.xlu1 %v557_v40, %s1292_s20  ;;  %v1423_v46 = vpop.f32.mrb[3].mxu0 }
 0x19d   : > { %v831_v47 = vcombine.low %v1421_v44, %v1423_v46  ;;  %v616_v4 = vcombine.high %v587_v62, %v587_v62  ;;  %v594_v13 = vrot.slane %v587_v62, %v1433_v60  ;;  %v1458_v15 = vrot.slane %v646_v5, %v1433_v60 }
 0x19e   : > { %721 = vrot.lane.b32.xlu0 %v716_v45, %s1292_s20  ;;  %v758_v39 = vcombine.high %v646_v5, %v646_v5 }
 0x19f   : > { %v623_v12 = vrot.slane %v616_v4, %v1433_v60  ;;  %v654_v25 = vcombine.high %v1458_v15, %v1458_v15  ;;  %v838_v41 = vrot.slane %v831_v47, %v1433_v60  ;;  %v799_v43 = vcombine.high %v594_v13, %v594_v13 }
 0x1a0   : > { %793 = vrot.lane.b32.xlu1 %v789_v48, %s1292_s20  ;;  %v765_v53 = vrot.slane %v758_v39, %v1433_v60 }
 0x1a1   : > { %v624_v21 = vcombine.high %v623_v12, %v623_v12 }
 0x1a2   : > { %754 = vrot.lane.b32.xlu0 %v749_v49, %s1293_s8 }
 0x1a4   : > { %633 = vrot.lane.b32.xlu1 %v628_v50, %s1293_s8 }
 0x1a8   : > { %795 = vrot.lane.b32.xlu1 %v790_v51, %s1292_s20 }
 0x1ac   : > { %823 = vrot.lane.b32.xlu1 %v1421_v44, %s1293_s8  ;;  %v845_v44 = vrot.slane %v838_v41, %v1433_v60 }
 0x1b0   : > { %825 = vrot.lane.b32.xlu1 %v1423_v46, %s1293_s8 }
 0x1b4   : > { %719 = vrot.lane.b32.xlu1 %v715_v52, %s1292_s20 }
 0x1b8   : > { %752 = vrot.lane.b32.xlu1 %v748_v54, %s1293_s8 }
 0x20a   : > { %v569_v59 = vpop.permute.xlu1 %568 }
 0x20c   : > { %v632_v7 = vpop.permute.xlu0 %631 }
 0x20e   : > { %v571_v61 = vpop.permute.xlu1 %570 }
 0x20f   : > { %v575_v63 = vsel %vm574_vm2, %v569_v59, %v571_v61  ;;  %v576_v0 = vsel %vm574_vm2, %v571_v61, %v569_v59 }
 0x210   : > { %v598_v1 = vcombine.low %v576_v0, %v575_v63  ;;  %v722_v42 = vpop.permute.xlu0 %721 }
 0x212   : > { %v605_v2 = vrot.slane %v598_v1, %v1433_v60  ;;  %v794_v3 = vpop.permute.xlu1 %793 }
 0x214   : > { %v612_v8 = vrot.slane %v605_v2, %v1433_v60  ;;  %v755_v55 = vpop.permute.xlu0 %754 }
 0x216   : > { %v634_v9 = vpop.permute.xlu1 %633  ;;  %v614_v16 = vsel %vm577_vm4, %v594_v13, %v612_v8 }
 0x217   : > { %v636_v10 = vsel %vm635_vm3, %v632_v7, %v634_v9  ;;  %v637_v11 = vsel %vm635_vm3, %v634_v9, %v632_v7  ;;  %v626_v26 = vadd.f32 %v624_v21, %v614_v16  ;;  %v766_v7 = vcombine.high %v765_v53, %v765_v53  ;;  %v1029_v9 = vld [vmem:[%s1559_s6] sm:$0xff] }
 0x218   : > { %v658_v14 = vcombine.low %v636_v10, %v637_v11  ;;  %v917_v10 = vld [vmem:[%s1557_s4] sm:$0xff]  ;;  %v998_v11 = vpop.f32.mrb[0].mxu1 }
 0x21a   : > { %v665_v17 = vrot.slane %v658_v14, %v1433_v60  ;;  %v796_v18 = vpop.permute.xlu1 %795 }
 0x21b   : > { %v797_v19 = vsel %vm574_vm2, %v794_v3, %v796_v18  ;;  %v798_v20 = vsel %vm574_vm2, %v796_v18, %v794_v3 }
 0x21c   : > { %v672_v22 = vrot.slane %v665_v17, %v1433_v60  ;;  %v803_v24 = vcombine.low %v798_v20, %v797_v19 }
 0x21e   : > { %v810_v31 = vrot.slane %v803_v24, %v1433_v60  ;;  %v824_v32 = vpop.permute.xlu1 %823  ;;  %v674_v33 = vsel %vm638_vm5, %v654_v25, %v672_v22 }
 0x21f   : > { %v1480_v34 = vadd.f32 %v674_v33, %v626_v26 }
 0x220   : > { %v817_v37 = vrot.slane %v810_v31, %v1433_v60 }
 0x221   : > { %v684_v35 = vrot.slane %v1480_v34, %v1472_v27  ;;  %v680_v36 = vrot.slane %v1480_v34, %v1475_v28 }
 0x222   : > { %v826_v38 = vpop.permute.xlu1 %825  ;;  %v819_v48 = vsel %vm577_vm4, %v799_v43, %v817_v37 }
 0x223   : > { %v827_v23 = vsel %vm635_vm3, %v824_v32, %v826_v38  ;;  %v828_v40 = vsel %vm635_vm3, %v826_v38, %v824_v32  ;;  %689 = vrot.lane.b32.xlu0 %v684_v35, %s1296_s24  ;;  %687 = vrot.lane.b32.xlu1 %v680_v36, %s1296_s24  ;;  %v822_v54 = vadd.f32 %v819_v48, %v765_v53 }
 0x224   : > { %v849_v45 = vcombine.low %v827_v23, %v828_v40  ;;  %v907_v23 = vstv %s906_s13 }
 0x226   : > { %v856_v49 = vrot.slane %v849_v45, %v1433_v60  ;;  %v720_v50 = vpop.permute.xlu1 %719 }
 0x227   : > { %v723_v51 = vsel %vm574_vm2, %v720_v50, %v722_v42  ;;  %v724_v52 = vsel %vm574_vm2, %v722_v42, %v720_v50 }
 0x228   : > { %v863_v46 = vrot.slane %v856_v49, %v1433_v60  ;;  %v728_v47 = vcombine.low %v724_v52, %v723_v51 }
 0x22a   : > { %v735_v56 = vrot.slane %v728_v47, %v1433_v60  ;;  %v753_v57 = vpop.permute.xlu1 %752  ;;  %v865_v59 = vsel %vm638_vm5, %v845_v44, %v863_v46 }
 0x22b   : > { %v756_v61 = vsel %vm635_vm3, %v753_v57, %v755_v55  ;;  %v757_v62 = vsel %vm635_vm3, %v755_v55, %v753_v57  ;;  %v866_v63 = vadd.f32 %v865_v59, %v822_v54 }
 0x22c   : > { %v742_v0 = vrot.slane %v735_v56, %v1433_v60  ;;  %v770_v1 = vcombine.low %v756_v61, %v757_v62 }
 0x22d   : > { %v875_v2 = vrot.slane %v866_v63, %v1472_v27  ;;  %v871_v3 = vrot.slane %v866_v63, %v1475_v28 }
 0x22e   : > { %v744_v4 = vsel %vm577_vm4, %v623_v12, %v742_v0  ;;  %v777_v5 = vrot.slane %v770_v1, %v1433_v60  ;;  %v1000_v12 = vpop.f32.mrb[1].mxu1 }
 0x22f   : > { %880 = vrot.lane.b32.xlu0 %v875_v2, %s1297_s25  ;;  %878 = vrot.lane.b32.xlu1 %v871_v3, %s1297_s25  ;;  %v747_v13 = vadd.f32 %v744_v4, %v1458_v15  ;;  %v1110_v16 = vpop.f32.mrb[2].mxu1  ;;  %v567_v15 = vld [vmem:[%s1563_s10] sm:$0x3] }
 0x230   : > { %v784_v8 = vrot.slane %v777_v5, %v1433_v60  ;;  %v1112_v18 = vpop.f32.mrb[3].mxu1  ;;  %vm694_vm8 = vcmp.eq.s32.totalorder %v567_v15, 0  ;;  %vm885_vm9 = vcmp.eq.s32.totalorder %v567_v15, 15 }
 0x232   : > { %v786_v14 = vsel %vm638_vm5, %v766_v7, %v784_v8 }
 0x233   : > { %v787_v17 = vadd.f32 %v786_v14, %v747_v13  ;;  %1032 = vperm.xlu0 %1272, %v1029_v9   ;;  %920 = vperm.xlu1 %1271, %v917_v10  }
 0x295   : > { %v690_v19 = vpop.permute.xlu0 %689  ;;  %v688_v20 = vpop.permute.xlu1 %687 }
 0x296   : > { %v692_v21 = vsel %vm691_vm6, %v688_v20, %v690_v19  ;;  %v693_v22 = vsel %vm691_vm6, %v690_v19, %v688_v20 }
 0x297   : > { %v697_v24 = vcombine.low %v693_v22, %v692_v21 }
 0x299   : > { %v704_v25 = vrot.slane %v697_v24, %v1433_v60 }
 0x29b   : > { %v711_v6 = vrot.slane %v704_v25, %v1433_v60 }
 0x29d   : > { %v713_v36 = vsel %vm694_vm8, %v1480_v34, %v711_v6 }
 0x29e   : > { %v788_v39 = vadd.f32 %v787_v17, %v713_v36 }
 0x2a1   : > { %v881_v26 = vpop.permute.xlu0 %880  ;;  %v879_v31 = vpop.permute.xlu1 %878 }
 0x2a2   : > { %v883_v32 = vsel %vm882_vm7, %v879_v31, %v881_v26  ;;  %v884_v33 = vsel %vm882_vm7, %v881_v26, %v879_v31 }
 0x2a3   : > { %v888_v35 = vcombine.low %v883_v32, %v884_v33 }
 0x2a5   : > { %v895_v37 = vrot.slane %v888_v35, %v1433_v60 }
 0x2a7   : > { %v902_v38 = vrot.slane %v895_v37, %v1433_v60 }
 0x2a9   : > { %v904_v40 = vsel %vm885_vm9, %v866_v63, %v902_v38 }
 0x2aa   : > { %v905_v58 = vadd.f32 %v904_v40, %v788_v39 }
 0x2ac   : > { %v908_v41 = vadd.f32 %v907_v23, %v905_v58 }
 0x2ae   : > { %v1242_v42 = vmul.f32 -1.442695, %v908_v41 }
 0x2b0   : > { %1278 = vpow2.f32 %v1242_v42 }
 0x2b2   : > { %v921_v48 = vpop.permute.xlu1 %920  ;;  %v1033_v49 = vpop.permute.xlu0 %1032 }
 0x2b3   : > { %v999_v50 = vadd.f32 %v998_v11, %v921_v48  ;;  %v1001_v51 = vadd.f32 %v1000_v12, %v921_v48  ;;  %v1111_v34 = vadd.f32 %v1110_v16, %v1033_v49  ;;  %v1113_v52 = vadd.f32 %v1112_v18, %v1033_v49 }
 0x2b5   : > { %v1004_v53 = vmul.f32 %v999_v50, %v1383_v29  ;;  %v1008_v44 = vrot.slane %v999_v50, 4  ;;  %v1005_v60 = vmul.f32 %v1001_v51, %v1387_v30  ;;  %v1009_v46 = vrot.slane %v1001_v51, 4 }
 0x2b6   : > { %v1115_v47 = vmul.f32 %v1111_v34, %v1383_v29  ;;  %v1116_v54 = vmul.f32 %v1113_v52, %v1387_v30  ;;  %v1119_v55 = vrot.slane %v1111_v34, 4  ;;  %v1120_v56 = vrot.slane %v1113_v52, 4 }
 0x2b7   : > { %v1012_v59 = vadd.f32 %v1008_v44, %v1004_v53  ;;  %v1013_v0 = vadd.f32 %v1009_v46, %v1005_v60 }
 0x2b8   : > { %v1123_v1 = vadd.f32 %v1119_v55, %v1115_v47  ;;  %v1124_v2 = vadd.f32 %v1120_v56, %v1116_v54 }
 0x2ba   : > { %v1279_v43 = vpop.eup %1278 }
 0x2bb   : > { %v912_v45 = vadd.f32 1.0, %v1279_v43 }
 0x2bd   : > { %1280 = vrcp.f32 %v912_v45 }
 0x2c7   : > { %v1281_v57 = vpop.eup %1280 }
 0x2c8   : > { %v1125_v61 = vsub.f32 1.0, %v1281_v57  ;;  %v1018_v62 = vrot.slane %v1281_v57, %v1475_v28  ;;  %v1022_v63 = vrot.slane %v1281_v57, %v1472_v27 }
 0x2ca   : > { %v1130_v3 = vrot.slane %v1125_v61, %v1475_v28  ;;  %v1134_v4 = vrot.slane %v1125_v61, %v1472_v27  ;;  %v1025_v29 = vmul.f32 %v1018_v62, %v1012_v59  ;;  %v1026_v5 = vmul.f32 %v1022_v63, %v1013_v0 }
 0x2cc   : > { %v1137_v30 = vmul.f32 %v1130_v3, %v1123_v1  ;;  %v1138_v7 = vmul.f32 %v1134_v4, %v1124_v2 }
 0x2ce   : > { %v1139_v8 = vadd.f32 %v1137_v30, %v1025_v29  ;;  %v1140_v9 = vadd.f32 %v1138_v7, %v1026_v5 }
 0x2d0   : > { %v1143_v10 = vcombine.low %v1139_v8, %v1140_v9 }
 0x2d2   : > { %1145 = vst [vmem:[%s427_s16] sm:$0xff] %v1143_v10 }
 0x2d3 PF: > { %s22_s19 = sadd.s32 1, %s1288_s19  }
 0x2d4   : > { %p19_p4 = scmp.ge.s32.totalorder %s22_s19, 4  }
 0x2d6   :  { %21 = sbr.rel (!%p19_p4) target bundleno = 2 (0x2), region = 100 }

</bundles_post_ra>
